<compile_context>
chip_gen: v7x
topology: tpu7x:2x2x1
jax: 0.10.0
libtpu: 0.0.40
codegen_flags: <defaults>
</compile_context>

<pallas_src>
import jax
import jax.numpy as jnp
from jax.experimental import pallas as pl
from jax.experimental.pallas import tpu as pltpu


def linear_sigmoid_kernel(params_ref, xt_ref, o_ref):
    # params_ref: SMEM f32[3] = [w0, w1, b]
    # xt_ref:     VMEM f32[2, TS, 128]  (feature planes; batch dense on sublanes x lanes)
    # o_ref:      VMEM    [TS, 128]
    w0 = params_ref[0]
    w1 = params_ref[1]
    b0 = params_ref[2]
    # Two VALU FMAs per vreg over dense (TS, 128) planes; MXU stays out of the way.
    y = xt_ref[0] * w0 + xt_ref[1] * w1 + b0
    # exp / reciprocal route to the EUP slot (idle here); exact f32 in the datapath.
    o_ref[...] = jax.nn.sigmoid(y).astype(o_ref.dtype)


def linear_sigmoid_lane_major(xt, w, b, *, max_rows_per_tile=2048, out_dtype=jnp.float32):
    """Core Pallas path.

    xt: (2, B) float32, feature-major (batch on the fast axis). If your producer can
        emit this layout directly, call this function and skip the wrapper transpose.
    Returns a (Rp, 128) lane-major result with
        result[r, l] = sigmoid(x[r*128 + l] @ w + b)   for r*128 + l < B
    (padded lanes beyond B hold sigmoid(b) and should be ignored by the consumer).
    """
    K, B = xt.shape
    assert K == 2, "SimpleModel expects in_features == 2"

    # Rows of 128 lanes covering the batch.
    R = pl.cdiv(B, 128)
    # Tile rows: full array if it fits one tile, else a multiple-of-8 row count so the
    # (8, 128) block constraint holds. 2048 rows -> 2 MB input block, 1 MB output block.
    max_rows = max(8, (max_rows_per_tile // 8) * 8)
    if R <= max_rows:
        TS, Rp = R, R
    else:
        TS = max_rows
        Rp = TS * pl.cdiv(R, TS)
    Bp = Rp * 128

    # Tail pad only when the batch is unaligned (one pass over x; skipped otherwise).
    if Bp != B:
        xt = jnp.pad(xt, ((0, 0), (0, Bp - B)))
    # Free row-major reshape: (2, Bp) -> (2, Rp, 128). Dense sublane x lane tiles.
    xt3 = xt.reshape(2, Rp, 128)

    # Weights + bias as 3 SMEM scalars: [w0, w1, b]. No padded VMEM tiles for 12 bytes.
    params = jnp.concatenate(
        [w.reshape(-1).astype(jnp.float32), b.reshape(-1).astype(jnp.float32)]
    )  # (3,)

    grid = (Rp // TS,)
    # NOTE: pipeline_mode=pl.Buffered(3) on the x spec is an optional few-% win once
    # tiles are this large; left at the default depth of 2 here.
    return pl.pallas_call(
        linear_sigmoid_kernel,
        out_shape=jax.ShapeDtypeStruct((Rp, 128), out_dtype),
        grid=grid,
        in_specs=[
            pl.BlockSpec(memory_space=pltpu.MemorySpace.SMEM),    # params: whole array
            pl.BlockSpec((2, TS, 128), lambda i: (0, i, 0)),      # dense feature planes
        ],
        out_specs=pl.BlockSpec((TS, 128), lambda i: (i, 0)),      # dense output tile
        compiler_params=pltpu.CompilerParams(
            # Batch tiles are independent: shard across both TensorCores on v7x
            # (no-op on single-TC v5e/v6e).
            dimension_semantics=("parallel",),
        ),
        cost_estimate=pl.CostEstimate(
            flops=4 * Bp,            # 2 mul + 2 add per element
            transcendentals=Bp,      # sigmoid
            bytes_accessed=12 * Bp,  # 8 B read + 4 B written per element
        ),
    )(params, xt3)


def simple_model_forward(x, w, b, *, small_batch_threshold=2048, force_pallas=False,
                         max_rows_per_tile=2048, out_dtype=jnp.float32):
    """x: (B, 2), w: (2, 1), b: (1, 1) -> (B, 1); matches sigmoid(x @ w + b)."""
    B, K = x.shape
    assert K == 2, "SimpleModel expects in_features == 2"
    assert w.shape[0] == 2 and w.shape[1] == 1, "SimpleModel expects Linear(2, 1)"

    # Small-batch fast path: a standalone pallas_call is pure launch + relayout
    # overhead at tiny B; plain XLA fuses with neighbors and is strictly faster.
    if B < small_batch_threshold and not force_pallas:
        return jax.nn.sigmoid(x.astype(jnp.float32) @ w + b).astype(out_dtype)

    # Single relayout pass to feature-major. Producers that can emit (2, B) directly
    # should call linear_sigmoid_lane_major and skip this transpose entirely.
    xt = x.astype(jnp.float32).T  # (2, B)
    out = linear_sigmoid_lane_major(
        xt, w, b, max_rows_per_tile=max_rows_per_tile, out_dtype=out_dtype
    )
    # (Rp,128) -> (Bp,) is a free reshape; [:B] touches output bytes only. Consumers
    # that accept the lane-major layout should use linear_sigmoid_lane_major directly.
    return out.reshape(-1)[:B].reshape(B, 1)


if __name__ == "__main__":
    key = jax.random.PRNGKey(0)
    kx1, kx2, kx3, kw, kb = jax.random.split(key, 5)

    in_features, out_features = 2, 1

    # Deterministic params (mimics PyTorch Linear's U(-1/sqrt(fan_in), 1/sqrt(fan_in))).
    bound = 1.0 / jnp.sqrt(jnp.float32(in_features))
    w = jax.random.uniform(kw, (in_features, out_features), jnp.float32, -bound, bound)
    b = jax.random.uniform(kb, (1, out_features), jnp.float32, -bound, bound)

    def ref(x):
        return jax.nn.sigmoid(x @ w + b)

    # 1) Tiny batch (module's typical trainer use): small-batch XLA fast path.
    x_small = jax.random.normal(kx1, (8, in_features), jnp.float32)
    y_small = jax.block_until_ready(simple_model_forward(x_small, w, b))
    assert y_small.shape == (8, out_features)
    assert jnp.allclose(y_small, ref(x_small), atol=1e-5), "small-batch mismatch"

    # 2) Pallas path, 128-aligned batch (no pad pass, single dense tile).
    x_big = jax.random.normal(kx2, (4096, in_features), jnp.float32)
    y_big = jax.block_until_ready(simple_model_forward(x_big, w, b, force_pallas=True))
    assert y_big.shape == (4096, out_features)
    assert jnp.allclose(y_big, ref(x_big), atol=1e-5), "aligned Pallas mismatch"

    # 3) Pallas path, unaligned batch (exercises tail padding + masking-by-slice).
    x_odd = jax.random.normal(kx3, (1000, in_features), jnp.float32)
    y_odd = jax.block_until_ready(simple_model_forward(x_odd, w, b, force_pallas=True))
    assert y_odd.shape == (1000, out_features)
    assert jnp.allclose(y_odd, ref(x_odd), atol=1e-5), "unaligned Pallas mismatch"

    print("KERNEL_OK")
</pallas_src>

<mosaic_0001>
module attributes {stable_mosaic.version = 11 : i64} {
  func.func @linear_sigmoid_kernel(%arg0: i32, %arg1: memref<3xf32, #tpu.memory_space<smem>>, %arg2: memref<2x32x128xf32, #tpu.memory_space<vmem>>, %arg3: memref<32x128xf32, #tpu.memory_space<vmem>>) attributes {dimension_semantics = [#tpu.dimension_semantics<parallel>], iteration_bounds = array<i64: 1>, scalar_prefetch = 0 : i64, scratch_operands = 0 : i64, tpu.core_type = #tpu.core_type<tc>, window_params = [{transform_indices = @transform_0, window_bounds = array<i64: 3>}, {transform_indices = @transform_1, window_bounds = array<i64: 2, 32, 128>}, {transform_indices = @transform_2, window_bounds = array<i64: 32, 128>}]} {
    %c0 = arith.constant 0 : index
    %0 = memref.load %arg1[%c0] : memref<3xf32, #tpu.memory_space<smem>>
    %c1 = arith.constant 1 : index
    %1 = memref.load %arg1[%c1] : memref<3xf32, #tpu.memory_space<smem>>
    %c2 = arith.constant 2 : index
    %2 = memref.load %arg1[%c2] : memref<3xf32, #tpu.memory_space<smem>>
    %c0_0 = arith.constant 0 : index
    %c0_1 = arith.constant 0 : index
    %c0_2 = arith.constant 0 : index
    %3 = vector.load %arg2[%c0_0, %c0_1, %c0_2] : memref<2x32x128xf32, #tpu.memory_space<vmem>>, vector<1x32x128xf32>
    %4 = vector.shape_cast %3 : vector<1x32x128xf32> to vector<32x128xf32>
    %5 = vector.broadcast %0 : f32 to vector<32x128xf32>
    %6 = arith.mulf %4, %5 : vector<32x128xf32>
    %c1_3 = arith.constant 1 : index
    %c0_4 = arith.constant 0 : index
    %c0_5 = arith.constant 0 : index
    %7 = vector.load %arg2[%c1_3, %c0_4, %c0_5] : memref<2x32x128xf32, #tpu.memory_space<vmem>>, vector<1x32x128xf32>
    %8 = vector.shape_cast %7 : vector<1x32x128xf32> to vector<32x128xf32>
    %9 = vector.broadcast %1 : f32 to vector<32x128xf32>
    %10 = arith.mulf %8, %9 : vector<32x128xf32>
    %11 = arith.addf %6, %10 : vector<32x128xf32>
    %12 = vector.broadcast %2 : f32 to vector<32x128xf32>
    %13 = arith.addf %11, %12 : vector<32x128xf32>
    %14 = arith.negf %13 : vector<32x128xf32>
    %15 = math.exp %14 : vector<32x128xf32>
    %cst = arith.constant 1.000000e+00 : f32
    %16 = vector.broadcast %cst : f32 to vector<32x128xf32>
    %17 = arith.addf %16, %15 : vector<32x128xf32>
    %18 = arith.divf %16, %17 : vector<32x128xf32>
    %c0_6 = arith.constant 0 : index
    %c0_7 = arith.constant 0 : index
    %19 = vector.load %arg3[%c0_6, %c0_7] : memref<32x128xf32, #tpu.memory_space<vmem>>, vector<32x128xf32>
    tpu.vector_store %arg3[%c0_6, %c0_7], %18 {strides = array<i32>} : memref<32x128xf32, #tpu.memory_space<vmem>>, vector<32x128xf32>,
    return
  }
  func.func @transform_0(%arg0: i32) -> i32 {
    %c0_i32 = arith.constant 0 : i32
    %c0_i32_0 = arith.constant 0 : i32
    return %c0_i32 : i32
  }
  func.func @transform_1(%arg0: i32) -> (i32, i32, i32) {
    %c0_i32 = arith.constant 0 : i32
    %c0_i32_0 = arith.constant 0 : i32
    %c0_i32_1 = arith.constant 0 : i32
    return %c0_i32, %arg0, %c0_i32_0 : i32, i32, i32
  }
  func.func @transform_2(%arg0: i32) -> (i32, i32) {
    %c0_i32 = arith.constant 0 : i32
    %c0_i32_0 = arith.constant 0 : i32
    return %arg0, %c0_i32 : i32, i32
  }
}

</mosaic_0001>

<bundles_post_ra>
// kernel: tpu_custom_call.1
= control target key start
LH: loop header
LB: loop body
LE: loop exit
PB: predicated region body
PF: predicated region fallthrough
CT: control target
= control target key end

     0   :  { %7 = vsyncpa [#allocation5], 0  ;;  %s263_s0 = inlined_call_operand.hbm [shape: f32[3], index: 0, kind: input, shape index: {}]   ;;  %s264_s1 = inlined_call_operand.hbm [shape: f32[2,32,128], index: 1, kind: input, shape index: {}]   ;;  %s265_s2 = inlined_call_operand.hbm [shape: f32[32,128], index: 2, kind: output, shape index: {}]  }
   0x1   :  { %8 = vsyncpa [#allocation3], 0 }
   0x2   :  { %9 = vsyncpa [#allocation4], 0  ;;  %s141_s11 = scalar_lea.hbm %s263_s0, 16 }
   0x3   :  { %p142_p0 = scmp.ne.s32.totalorder %s263_s0, %s141_s11  ;;  %p145_p1 = scmp.lt.u32.totalorder %s141_s11, %s263_s0 }
   0x5   :  { %p147_p2 = pnand %p145_p1, %p142_p0 }
   0x7   :  { %150 = shalt.err (!%p147_p2)
}
   0x8   :  { %s201_s16 = smov [#allocation2]   ;;  %s202_s19 = smov [#allocation6]  }
   0x9   :  { %17 = dma.hbm_to_smem %s263_s0, 16, %s201_s16, [#allocation5]  }
   0xa   :  { %s23_s20 = sshll.u32 %s202_s19, 4  ;;  %s151_s23 = scalar_lea.hbm %s264_s1, 1024  ;;  %s24_s20 = int_to_ptr.vmem [resolvable:$true] %s23_s20 }
   0xb   :  { %p152_p3 = scmp.ne.s32.totalorder %s264_s1, %s151_s23  ;;  %p155_p4 = scmp.lt.u32.totalorder %s151_s23, %s264_s1 }
   0xd   :  { %p157_p5 = pnand %p155_p4, %p152_p3 }
   0xf   :  { %160 = shalt.err (!%p157_p5)
}
  0x10   :  { %s161_s28 = scalar_lea.vmem %s24_s20, 1024  ;;  %p166_p7 = scmp.lt.s32.totalorder %s24_s20, %s24_s20 }
  0x11   :  { %p162_p6 = scmp.ne.s32.totalorder %s24_s20, %s161_s28  ;;  %p167_p8 = scmp.lt.s32.totalorder %s161_s28, %s161_s28 }
  0x13   :  { %p168_p9 = por %p167_p8, %p166_p7 }
  0x15   :  { %p169_p10 = pnand %p168_p9, %p162_p6 }
  0x17   :  { %172 = shalt.err (!%p169_p10)
}
  0x18   :  { %s203_s0 = smov 128   ;;  %s204_s29 = smov 8  }
  0x19   :  { %29 = dma.hbm_to_vmem [thread:$0]  %s264_s1, 1024, %s24_s20, [#allocation3], %s203_s0, %s203_s0, %s204_s29  }
  0x1a   :  { %195 = dma.done.wait [#allocation5], 16  }
  0x1b   :  { %196 = vsyncadd [#allocation5], 4294967280 }
  0x1c   :  { %197 = dma.done.wait [#allocation3], 1024  }
  0x1d   :  { %198 = vsyncadd [#allocation3], 4294966272 }
  0x1e   :  { %36 = sfence }
  0x1f   :  { %s37_s4 = sld [smem:[#allocation2]]  ;;  %s114_s5 = sld [smem:[#allocation2 + $0x1]]  ;;  %v40_v0 = vld [vmem:[#allocation6] sm:$0xff]  ;;  %v41_v2 = vld [vmem:[#allocation6 + $0x8] sm:$0xff]  ;;  %v42_v4 = vld [vmem:[#allocation6 + $0x10] sm:$0xff] }
  0x20   :  { %s115_s6 = sld [smem:[#allocation2 + $0x2]]  ;;  %v50_v1 = vld [vmem:[#allocation6 + $0x20] sm:$0xff]  ;;  %v51_v3 = vld [vmem:[#allocation6 + $0x28] sm:$0xff]  ;;  %v52_v5 = vld [vmem:[#allocation6 + $0x30] sm:$0xff]  ;;  %s205_s1 = smov [#allocation7]  }
  0x21   :  { %v43_v6 = vld [vmem:[#allocation6 + $0x18] sm:$0xff]  ;;  %s101_s7 = sshll.u32 %s205_s1, 4  ;;  %s102_s7 = int_to_ptr.vmem [resolvable:$true] %s101_s7 }
  0x22   :  { %v53_v9 = vld [vmem:[#allocation6 + $0x38] sm:$0xff]  ;;  %s173_s8 = scalar_lea.vmem %s102_s7, 512  ;;  %p178_p12 = scmp.lt.s32.totalorder %s102_s7, %s102_s7 }
  0x23   :  { %p174_p11 = scmp.ne.s32.totalorder %s102_s7, %s173_s8  ;;  %p179_p13 = scmp.lt.s32.totalorder %s173_s8, %s173_s8 }
  0x25   :  { %v44_v7 = vstv %s37_s4  ;;  %v54_v8 = vstv %s114_s5  ;;  %p180_p0 = por %p179_p13, %p178_p12 }
  0x26   :  { %v45_v10 = vmul.f32 %v44_v7, %v40_v0  ;;  %v55_v11 = vmul.f32 %v54_v8, %v50_v1  ;;  %v63_v12 = vstv %s115_s6  ;;  %v46_v13 = vmul.f32 %v44_v7, %v41_v2 }
  0x27   :  { %v56_v14 = vmul.f32 %v54_v8, %v51_v3  ;;  %v47_v15 = vmul.f32 %v44_v7, %v42_v4  ;;  %v57_v16 = vmul.f32 %v54_v8, %v52_v5  ;;  %v48_v17 = vmul.f32 %v44_v7, %v43_v6  ;;  %p181_p1 = pnand %p180_p0, %p174_p11 }
  0x28   :  { %v59_v18 = vadd.f32 %v55_v11, %v45_v10  ;;  %v58_v19 = vmul.f32 %v54_v8, %v53_v9 }
  0x29   :  { %v60_v20 = vadd.f32 %v56_v14, %v46_v13  ;;  %v61_v21 = vadd.f32 %v57_v16, %v47_v15 }
  0x2a   :  { %v64_v22 = vadd.f32 %v63_v12, %v59_v18  ;;  %v62_v23 = vadd.f32 %v58_v19, %v48_v17 }
  0x2b   :  { %v65_v24 = vadd.f32 %v63_v12, %v60_v20  ;;  %v66_v25 = vadd.f32 %v63_v12, %v61_v21 }
  0x2c   :  { %v116_v26 = vmul.f32 -1.442695, %v64_v22  ;;  %v67_v27 = vadd.f32 %v63_v12, %v62_v23 }
  0x2d   :  { %v117_v28 = vmul.f32 -1.442695, %v65_v24  ;;  %v118_v29 = vmul.f32 -1.442695, %v66_v25 }
  0x2e   :  { %125 = vpow2.f32 %v116_v26  ;;  %v119_v30 = vmul.f32 -1.442695, %v67_v27 }
  0x2f   :  { %127 = vpow2.f32 %v117_v28 }
  0x30   :  { %129 = vpow2.f32 %v118_v29 }
  0x31   :  { %131 = vpow2.f32 %v119_v30 }
  0x38   :  { %v126_v31 = vpop.eup %125 }
  0x39   :  { %v128_v32 = vpop.eup %127  ;;  %v80_v33 = vadd.f32 1.0, %v126_v31 }
  0x3a   :  { %v130_v34 = vpop.eup %129  ;;  %v81_v35 = vadd.f32 1.0, %v128_v32 }
  0x3b   :  { %v132_v36 = vpop.eup %131  ;;  %133 = vrcp.f32 %v80_v33  ;;  %v82_v37 = vadd.f32 1.0, %v130_v34 }
  0x3c   :  { %135 = vrcp.f32 %v81_v35  ;;  %v83_v38 = vadd.f32 1.0, %v132_v36 }
  0x3d   :  { %137 = vrcp.f32 %v82_v37 }
  0x3e   :  { %139 = vrcp.f32 %v83_v38 }
  0x45   :  { %v134_v39 = vpop.eup %133 }
  0x46   :  { %v136_v40 = vpop.eup %135  ;;  %92 = vst [vmem:[#allocation7] sm:$0xff] %v134_v39 }
  0x47   :  { %v138_v41 = vpop.eup %137  ;;  %93 = vst [vmem:[#allocation7 + $0x8] sm:$0xff] %v136_v40 }
  0x48   :  { %v140_v42 = vpop.eup %139  ;;  %94 = vst [vmem:[#allocation7 + $0x10] sm:$0xff] %v138_v41 }
  0x49   :  { %95 = vst [vmem:[#allocation7 + $0x18] sm:$0xff] %v140_v42 }
  0x4a   :  { %184 = shalt.err (!%p181_p1)
}
  0x4b   :  { %s185_s11 = scalar_lea.hbm %s265_s2, 512 }
  0x4c   :  { %p186_p2 = scmp.ne.s32.totalorder %s265_s2, %s185_s11  ;;  %p189_p3 = scmp.lt.u32.totalorder %s185_s11, %s265_s2 }
  0x4e   :  { %p191_p4 = pnand %p189_p3, %p186_p2 }
  0x50   :  { %194 = shalt.err (!%p191_p4)
}
  0x51   :  { %107 = dma.vmem_to_hbm [thread:$0]  %s102_s7, 512, %s265_s2, [#allocation4], %s203_s0, %s203_s0, %s204_s29  }
  0x52   :  { %199 = dma.done.wait [#allocation4], 512  }
  0x53   :  { %200 = vsyncadd [#allocation4], 4294966784 }
  0x54   :  { %111 = vsyncpa [#allocation3], 1 }
  0x55   :  { %112 = vsyncpa [#allocation4], 1 }
  0x56   :  { %113 = vsyncpa [#allocation5], 1 }

</bundles_post_ra>
